<compile_context>
chip_gen: v7x
topology: tpu7x:2x2x1
jax: 0.10.0
libtpu: 0.0.40
codegen_flags: <defaults>
</compile_context>

<pallas_src>
import jax
import jax.numpy as jnp
from jax.experimental import pallas as pl
from jax.experimental.pallas import tpu as pltpu


def _round_up(x, m):
    return ((x + m - 1) // m) * m


# ----------------------------- Pallas kernel ------------------------------ #

def _term_encoder_kernel(feats_ref, w_ref, b_ref, out_ref):
    """One row-tile of terms.

    feats_ref : (TM, F)  bf16 pre-featurized term vectors
    w_ref     : (F, D)   bf16 term-encoder weight (resident across the grid)
    b_ref     : (1, D)   f32 term-encoder bias
    out_ref   : (TM, D)  f32 term embeddings (lane-dense, D = 128)
    """
    acc = jnp.dot(feats_ref[...], w_ref[...],
                  preferred_element_type=jnp.float32)   # MXU bf16 -> f32 acc
    out_ref[...] = jnp.tanh(acc + b_ref[...])           # EUP tanh, VPU add


def embed_terms_pallas(feats, w, b, *, max_tile=512):
    """feats: [N, F] bf16, w: [F, D] bf16, b: [D] f32 -> [N, D] f32."""
    n, f = feats.shape
    d = w.shape[1]

    # Large row tiles amortize the ~0.35 us/step pipeline overhead; keep them
    # a multiple of 16 (bf16 sublane packing).  VMEM use at tile 512:
    # feats 32 KiB + out 256 KiB + W 8 KiB (double-buffered) << 32 MiB scoped.
    tile_m = min(max_tile, _round_up(n, 16))
    n_pad = _round_up(n, tile_m)
    if n_pad != n:
        # TODO(synk): could drop this pad by letting Pallas mask the ragged
        # tail block; kept explicit for robustness (pad is <= one tile).
        feats = jnp.pad(feats, ((0, n_pad - n), (0, 0)))

    grid = (n_pad // tile_m,)
    cost = pl.CostEstimate(
        flops=2 * n_pad * f * d,
        transcendentals=n_pad * d,
        bytes_accessed=(feats.dtype.itemsize * n_pad * f
                        + w.dtype.itemsize * f * d
                        + 4 * d
                        + 4 * n_pad * d),
    )

    out = pl.pallas_call(
        _term_encoder_kernel,
        out_shape=jax.ShapeDtypeStruct((n_pad, d), jnp.float32),
        grid_spec=pltpu.PrefetchScalarGridSpec(
            num_scalar_prefetch=0,
            grid=grid,
            in_specs=[
                pl.BlockSpec((tile_m, f), lambda i: (i, 0)),   # feats row-tile
                pl.BlockSpec((f, d), lambda i: (0, 0)),        # W (resident)
                pl.BlockSpec((1, d), lambda i: (0, 0)),        # bias
            ],
            out_specs=pl.BlockSpec((tile_m, d), lambda i: (i, 0)),
        ),
        compiler_params=pltpu.CompilerParams(
            dimension_semantics=("parallel",),                 # v7x: 2 TCs
        ),
        cost_estimate=cost,
    )(feats, w, b.reshape(1, d))
    return out[:n]


# ------------------------------ Prover wrapper ----------------------------- #

class ProverPallas:
    """Mirrors Prover.embed_terms semantics on top of the Pallas kernel.

    The recursive TreeLSTM TermEncoder (data-dependent AST traversal) and the
    autoregressive TacticDecoder have no clean Pallas equivalent; the dense
    encoder above stands in for the per-term embedding compute.
    """

    def __init__(self, feat_dim=32, term_embedding_dim=128, key=None):
        self.feat_dim = feat_dim
        self.term_dim = term_embedding_dim
        key = jax.random.PRNGKey(0) if key is None else key
        kw, kb = jax.random.split(key)
        scale = 1.0 / jnp.sqrt(feat_dim)
        # Weights stored bf16 for the MXU bf16 path; bias stays f32.
        self.w = (jax.random.normal(kw, (feat_dim, term_embedding_dim),
                                    jnp.float32) * scale).astype(jnp.bfloat16)
        self.b = (jax.random.normal(kb, (term_embedding_dim,),
                                    jnp.float32) * 0.01)

    def embed_terms(self, environment_feats, context_feats, goal_feats,
                    *, max_tile=512):
        """Args: lists (len = batch) of [size_n, F] arrays; goal is [B, F].

        Returns (environment_embeddings, context_embeddings, goal_embeddings)
        exactly as Prover.embed_terms does:
          env[n]:     [len(env_n), 3 + D]   with column 0 == 1.0
          context[n]: [len(ctx_n), 3 + D]   with column 1 == 1.0
          goal:       [B, 3 + D]            with column 2 == 1.0
        """
        batchsize = len(environment_feats)
        env_sizes = [f.shape[0] for f in environment_feats]
        ctx_sizes = [f.shape[0] for f in context_feats]

        # Same flattening order as the PyTorch code: env terms, context terms,
        # one goal per batch element.
        all_feats = jnp.concatenate(
            environment_feats + context_feats + [goal_feats],
            axis=0).astype(jnp.bfloat16)
        n_env = sum(env_sizes)
        n_ctx = sum(ctx_sizes)
        n_total = n_env + n_ctx + batchsize

        # Lane-dense [N, 128] embeddings from the kernel.
        emb = embed_terms_pallas(all_feats, self.w, self.b, max_tile=max_tile)

        # Role flags built outside the kernel (keeps the kernel output
        # 128-lane aligned); one fused concat gives the [N, 3 + D] layout.
        idx = jnp.arange(n_total)
        roles = jnp.stack(
            [idx < n_env,
             (idx >= n_env) & (idx < n_env + n_ctx),
             idx >= n_env + n_ctx],
            axis=1).astype(jnp.float32)
        out = jnp.concatenate([roles, emb], axis=1)

        # Split back into the per-batch structure Prover.embed_terms returns.
        # NOTE: each slice is a separate XLA op; for large proof states prefer
        # returning `out` plus offsets and slicing lazily.
        environment_embeddings, context_embeddings = [], []
        j = 0
        for n in range(batchsize):
            s = env_sizes[n]
            environment_embeddings.append(out[j:j + s])
            j += s
        for n in range(batchsize):
            s = ctx_sizes[n]
            context_embeddings.append(out[j:j + s])
            j += s
        goal_embeddings = out[j:j + batchsize]
        return environment_embeddings, context_embeddings, goal_embeddings

    def forward(self, environment_feats, context_feats, goal_feats):
        env_emb, ctx_emb, goal_emb = self.embed_terms(
            environment_feats, context_feats, goal_feats)
        environment = [{'embeddings': env_emb[i]} for i in range(len(env_emb))]
        local_context = [{'embeddings': ctx_emb[i]} for i in range(len(ctx_emb))]
        goal = {'embeddings': goal_emb}
        # TODO(synk): tactic_decoder is an autoregressive, grammar-driven AST
        # generator with data-dependent control flow — no Pallas equivalent.
        loss = jnp.float32(0.0)
        return (environment, local_context, goal), loss


# ------------------------------- reference -------------------------------- #

def _reference(feats_list, w_bf16, b_f32, role_ids):
    feats = jnp.concatenate(feats_list, axis=0).astype(jnp.bfloat16)
    emb = jnp.tanh(
        jnp.dot(feats, w_bf16, preferred_element_type=jnp.float32) + b_f32)
    roles = jax.nn.one_hot(role_ids, 3, dtype=jnp.float32)
    return jnp.concatenate([roles, emb], axis=1)


if __name__ == "__main__":
    key = jax.random.PRNGKey(0)
    k_env0, k_env1, k_ctx0, k_ctx1, k_goal, k_params, k_big = (
        jax.random.split(key, 7))

    F, D = 32, 128

    # --- small module-shaped test: batch=2, env [3,2], ctx [2,1], 2 goals ---
    environment_feats = [
        jax.random.normal(k_env0, (3, F), jnp.float32),
        jax.random.normal(k_env1, (2, F), jnp.float32),
    ]
    context_feats = [
        jax.random.normal(k_ctx0, (2, F), jnp.float32),
        jax.random.normal(k_ctx1, (1, F), jnp.float32),
    ]
    goal_feats = jax.random.normal(k_goal, (2, F), jnp.float32)

    prover = ProverPallas(feat_dim=F, term_embedding_dim=D, key=k_params)
    (environment, local_context, goal), loss = prover.forward(
        environment_feats, context_feats, goal_feats)

    goal_emb = jax.block_until_ready(goal['embeddings'])
    env_emb = [jax.block_until_ready(e['embeddings']) for e in environment]
    ctx_emb = [jax.block_until_ready(c['embeddings']) for c in local_context]

    role_ids = jnp.array([0] * 5 + [1] * 3 + [2] * 2, jnp.int32)
    ref = _reference(environment_feats + context_feats + [goal_feats],
                     prover.w, prover.b, role_ids)
    got = jnp.concatenate(env_emb + ctx_emb + [goal_emb], axis=0)
    assert got.shape == (10, 3 + D)
    assert jnp.allclose(got, ref, atol=1e-3, rtol=1e-3)
    # Role flags exactly as Prover.embed_terms sets them.
    assert bool(jnp.all(env_emb[0][:, 0] == 1.0))
    assert bool(jnp.all(env_emb[0][:, 1:3] == 0.0))
    assert bool(jnp.all(ctx_emb[0][:, 1] == 1.0))
    assert bool(jnp.all(goal_emb[:, 2] == 1.0))

    # --- multi-tile path: force tile 64 so the grid has >1 step + tail pad ---
    ka, kb2, kc, kd2 = jax.random.split(k_big, 4)
    env2 = [jax.random.normal(ka, (40, F), jnp.float32),
            jax.random.normal(kb2, (24, F), jnp.float32)]
    ctx2 = [jax.random.normal(kc, (10, F), jnp.float32),
            jax.random.normal(kd2, (6, F), jnp.float32)]
    goal2 = jax.random.normal(k_goal, (2, F), jnp.float32)
    env_e2, ctx_e2, goal_e2 = prover.embed_terms(env2, ctx2, goal2, max_tile=64)
    got2 = jax.block_until_ready(
        jnp.concatenate(env_e2 + ctx_e2 + [goal_e2], axis=0))
    role_ids2 = jnp.array([0] * 64 + [1] * 16 + [2] * 2, jnp.int32)
    ref2 = _reference(env2 + ctx2 + [goal2], prover.w, prover.b, role_ids2)
    assert got2.shape == (82, 3 + D)
    assert jnp.allclose(got2, ref2, atol=1e-3, rtol=1e-3)

    print("KERNEL_OK")
</pallas_src>

<mosaic_0001>
module attributes {stable_mosaic.version = 11 : i64} {
  func.func @_term_encoder_kernel(%arg0: i32, %arg1: memref<16x32xbf16, #tpu.memory_space<vmem>>, %arg2: memref<32x128xbf16, #tpu.memory_space<vmem>>, %arg3: memref<1x128xf32, #tpu.memory_space<vmem>>, %arg4: memref<16x128xf32, #tpu.memory_space<vmem>>) attributes {dimension_semantics = [#tpu.dimension_semantics<parallel>], iteration_bounds = array<i64: 1>, scalar_prefetch = 0 : i64, scratch_operands = 0 : i64, tpu.core_type = #tpu.core_type<tc>, window_params = [{transform_indices = @transform_0, window_bounds = array<i64: 16, 32>}, {pipeline_mode = #tpu.pipeline_mode<synchronous>, transform_indices = @transform_1, window_bounds = array<i64: 32, 128>}, {pipeline_mode = #tpu.pipeline_mode<synchronous>, transform_indices = @transform_2, window_bounds = array<i64: 1, 128>}, {transform_indices = @transform_3, window_bounds = array<i64: 16, 128>}]} {
    %c0 = arith.constant 0 : index
    %c0_0 = arith.constant 0 : index
    %0 = vector.load %arg1[%c0, %c0_0] : memref<16x32xbf16, #tpu.memory_space<vmem>>, vector<16x32xbf16>
    %c0_1 = arith.constant 0 : index
    %c0_2 = arith.constant 0 : index
    %1 = vector.load %arg2[%c0_1, %c0_2] : memref<32x128xbf16, #tpu.memory_space<vmem>>, vector<32x128xbf16>
    %cst = arith.constant dense<0.000000e+00> : vector<16x128xf32>
    %2 = tpu.matmul %0, %1, %cst {dimension_numbers = #tpu.dot_dimension_numbers<[1], [0], [0], [1], [0, 0, 1, 1], [], []>} : vector<16x32xbf16>, vector<32x128xbf16>, vector<16x128xf32> -> vector<16x128xf32>
    %c0_3 = arith.constant 0 : index
    %c0_4 = arith.constant 0 : index
    %3 = vector.load %arg3[%c0_3, %c0_4] : memref<1x128xf32, #tpu.memory_space<vmem>>, vector<1x128xf32>
    %4 = vector.broadcast %3 : vector<1x128xf32> to vector<16x128xf32>
    %5 = arith.addf %2, %4 : vector<16x128xf32>
    %6 = math.tanh %5 : vector<16x128xf32>
    %c0_5 = arith.constant 0 : index
    %c0_6 = arith.constant 0 : index
    %7 = vector.load %arg4[%c0_5, %c0_6] : memref<16x128xf32, #tpu.memory_space<vmem>>, vector<16x128xf32>
    tpu.vector_store %arg4[%c0_5, %c0_6], %6 {strides = array<i32>} : memref<16x128xf32, #tpu.memory_space<vmem>>, vector<16x128xf32>,
    return
  }
  func.func @transform_0(%arg0: i32) -> (i32, i32) {
    %c0_i32 = arith.constant 0 : i32
    %c0_i32_0 = arith.constant 0 : i32
    return %arg0, %c0_i32 : i32, i32
  }
  func.func @transform_1(%arg0: i32) -> (i32, i32) {
    %c0_i32 = arith.constant 0 : i32
    %c0_i32_0 = arith.constant 0 : i32
    %c0_i32_1 = arith.constant 0 : i32
    return %c0_i32, %c0_i32_0 : i32, i32
  }
  func.func @transform_2(%arg0: i32) -> (i32, i32) {
    %c0_i32 = arith.constant 0 : i32
    %c0_i32_0 = arith.constant 0 : i32
    %c0_i32_1 = arith.constant 0 : i32
    return %c0_i32, %c0_i32_0 : i32, i32
  }
  func.func @transform_3(%arg0: i32) -> (i32, i32) {
    %c0_i32 = arith.constant 0 : i32
    %c0_i32_0 = arith.constant 0 : i32
    return %arg0, %c0_i32 : i32, i32
  }
}

</mosaic_0001>

<bundles_post_ra>
// kernel: tpu_custom_call.1
= control target key start
LH: loop header
LB: loop body
LE: loop exit
PB: predicated region body
PF: predicated region fallthrough
CT: control target
= control target key end

     0   :  { %8 = vsyncpa [#allocation3], 0  ;;  %s313_s0 = inlined_call_operand.hbm [shape: bf16[16,32], index: 0, kind: input, shape index: {}]   ;;  %s314_s1 = inlined_call_operand.hbm [shape: bf16[32,128], index: 1, kind: input, shape index: {}]   ;;  %s315_s2 = inlined_call_operand.vmem [shape: f32[1,128], index: 2, kind: input, shape index: {}]   ;;  %s316_s3 = inlined_call_operand.hbm [shape: f32[16,128], index: 3, kind: output, shape index: {}]  }
   0x1   :  { %9 = vsyncpa [#allocation6], 0 }
   0x2   :  { %10 = vsyncpa [#allocation4], 0  ;;  %s245_s12 = smov [#allocation2]   ;;  %s173_s16 = scalar_lea.hbm %s313_s0, 128 }
   0x3   :  { %s16_s13 = sshll.u32 %s245_s12, 4  ;;  %p174_p0 = scmp.ne.s32.totalorder %s313_s0, %s173_s16  ;;  %s17_s13 = int_to_ptr.vmem [resolvable:$true] %s16_s13 }
   0x4   :  { %p177_p1 = scmp.lt.u32.totalorder %s173_s16, %s313_s0 }
   0x6   :  { %p179_p2 = pnand %p177_p1, %p174_p0 }
   0x8   :  { %182 = shalt.err (!%p179_p2)
}
   0x9   :  { %s183_s21 = scalar_lea.vmem %s17_s13, 128  ;;  %p188_p4 = scmp.lt.s32.totalorder %s17_s13, %s17_s13 }
   0xa   :  { %p184_p3 = scmp.ne.s32.totalorder %s17_s13, %s183_s21  ;;  %p189_p5 = scmp.lt.s32.totalorder %s183_s21, %s183_s21 }
   0xc   :  { %p190_p6 = por %p189_p5, %p188_p4 }
   0xe   :  { %p191_p7 = pnand %p190_p6, %p184_p3 }
  0x10   :  { %194 = shalt.err (!%p191_p7)
}
  0x11   :  { %s246_s22 = smov 64   ;;  %s247_s23 = smov 4  }
  0x12   :  { %22 = dma.hbm_to_vmem [thread:$0]  %s313_s0, 128, %s17_s13, [#allocation3], %s246_s22, %s246_s22, %s247_s23  }
  0x13   :  { %s248_s26 = smov [#allocation5]   ;;  %s195_s30 = scalar_lea.hbm %s314_s1, 256 }
  0x14   :  { %s28_s27 = sshll.u32 %s248_s26, 4  ;;  %p196_p8 = scmp.ne.s32.totalorder %s314_s1, %s195_s30  ;;  %s29_s27 = int_to_ptr.vmem [resolvable:$true] %s28_s27 }
  0x15   :  { %p199_p9 = scmp.lt.u32.totalorder %s195_s30, %s314_s1 }
  0x17   :  { %p201_p10 = pnand %p199_p9, %p196_p8 }
  0x19   :  { %204 = shalt.err (!%p201_p10)
}
  0x1a   :  { %s205_s8 = scalar_lea.vmem %s29_s27, 256  ;;  %p210_p12 = scmp.lt.s32.totalorder %s29_s27, %s29_s27 }
  0x1b   :  { %p206_p11 = scmp.ne.s32.totalorder %s29_s27, %s205_s8  ;;  %p211_p13 = scmp.lt.s32.totalorder %s205_s8, %s205_s8 }
  0x1d   :  { %p212_p0 = por %p211_p13, %p210_p12 }
  0x1f   :  { %p213_p1 = pnand %p212_p0, %p206_p11 }
  0x21   :  { %216 = shalt.err (!%p213_p1)
}
  0x22   :  { %34 = dma.hbm_to_vmem [thread:$0]  %s314_s1, 256, %s29_s27, [#allocation6], %s246_s22, %s246_s22, %s247_s23  }
  0x23   :  { %239 = dma.done.wait [#allocation3], 128  }
  0x24   :  { %240 = vsyncadd [#allocation3], 4294967168 }
  0x25   :  { %241 = dma.done.wait [#allocation6], 256  }
  0x26   :  { %242 = vsyncadd [#allocation6], 4294967040  ;;  %v249_v0 = vmov 0.0   ;;  %vm250_vm0 = vmmov 0   ;;  %v166_v1 = vld [vmem:[#allocation5] sm:$0xff]   ;;  %v167_v2 = vld [vmem:[#allocation5 + $0x8] sm:$0xff]  }
  0x27   :  { %149 = vmatprep.subr.bf16.mxu0 %v249_v0  ;;  %153 = vmatprep.mubr.msk.bf16.mxu0 %vm250_vm0, %v249_v0  ;;  %v168_v3 = vld [vmem:[#allocation2] sm:$0xff]   ;;  %vm74_vm1 = vcmask 261120   ;;  %s251_s1 = smov [#allocation7]  }
  0x28   :  { %150 = vmatpush3.bf16.msra.mxu0 %v166_v1  ;;  %v141_v4 = vld [vmem:[%s315_s2] ss:$0 sm:$0xff]  ;;  %s128_s12 = sshll.u32 %s251_s1, 4  ;;  %s129_s12 = int_to_ptr.vmem [resolvable:$true] %s128_s12 }
  0x29   :  { %151 = vmatprep.subr.bf16.mxu0 %v249_v0  ;;  %s217_s13 = scalar_lea.vmem %s129_s12, 256  ;;  %p222_p3 = scmp.lt.s32.totalorder %s129_s12, %s129_s12 }
  0x2a   :  { %p218_p2 = scmp.ne.s32.totalorder %s129_s12, %s217_s13  ;;  %p223_p4 = scmp.lt.s32.totalorder %s217_s13, %s217_s13 }
  0x2c   :  { %152 = vmatpush3.bf16.msra.mxu0 %v167_v2  ;;  %p224_p5 = por %p223_p4, %p222_p3 }
  0x2e   :  { %p225_p6 = pnand %p224_p5, %p218_p2 }
  0x2f   :  { %154 = vmatmul.mubr.msk.bf16.vlgmr.msra.gmra.mrb[0].mxu0 %vm74_vm1, %v168_v3 }
 0x102   :  { %v112_v5 = vpop.f32.mrb[0].mxu0 }
 0x103   :  { %v113_v6 = vadd.f32 %v141_v4, %v112_v5  ;;  %v155_v7 = vpop.f32.mrb[1].mxu0 }
 0x104   :  { %v115_v8 = vpop.f32.mrb[2].mxu0 }
 0x105   :  { %169 = vtanh.f32 %v113_v6  ;;  %v116_v9 = vadd.f32 %v141_v4, %v115_v8  ;;  %v156_v10 = vpop.f32.mrb[3].mxu0 }
 0x107   :  { %171 = vtanh.f32 %v116_v9 }
 0x10f   :  { %v170_v11 = vpop.eup %169 }
 0x110   :  { %121 = vst [vmem:[#allocation7] sm:$0xff] %v170_v11 }
 0x111   :  { %v172_v12 = vpop.eup %171 }
 0x112   :  { %122 = vst [vmem:[#allocation7 + $0x8] sm:$0xff] %v172_v12 }
 0x113   :  { %228 = shalt.err (!%p225_p6)
}
 0x114   :  { %s229_s15 = scalar_lea.hbm %s316_s3, 256 }
 0x115   :  { %p230_p7 = scmp.ne.s32.totalorder %s316_s3, %s229_s15  ;;  %p233_p8 = scmp.lt.u32.totalorder %s229_s15, %s316_s3 }
 0x117   :  { %p235_p9 = pnand %p233_p8, %p230_p7 }
 0x119   :  { %238 = shalt.err (!%p235_p9)
}
 0x11a   :  { %s252_s20 = smov 128   ;;  %s253_s21 = smov 8  }
 0x11b   :  { %134 = dma.vmem_to_hbm [thread:$0]  %s129_s12, 256, %s316_s3, [#allocation4], %s252_s20, %s252_s20, %s253_s21  }
 0x11c   :  { %243 = dma.done.wait [#allocation4], 256  }
 0x11d   :  { %244 = vsyncadd [#allocation4], 4294967040 }
 0x11e   :  { %138 = vsyncpa [#allocation3], 1 }
 0x11f   :  { %139 = vsyncpa [#allocation6], 1 }
 0x120   :  { %140 = vsyncpa [#allocation4], 1 }

</bundles_post_ra>
